<compile_context>
chip_gen: v6e
topology: v6e:2x2x1
jax: 0.10.0
libtpu: 0.0.40
codegen_flags: <defaults>
</compile_context>

<pallas_src>
from functools import partial

import jax
import jax.numpy as jnp
import numpy as np
from jax import lax
from jax.experimental import pallas as pl
from jax.experimental.pallas import tpu as pltpu


def _conv_kernel(*refs, K, W, HWp, Bblk, fuse_crop):
    """Valid (padding=0) KxK conv for a block of Bblk images.

    refs (in order):
      x_ref : (Bblk, Cin, HWp)        NCHW input, spatial flattened onto lanes
      w_ref : (Cout, K*K*Cin)         im2col weights, tap-major (t = dy*K + dx)
      b_ref : (Cout, 1)               bias, broadcast along the lane axis
      s_ref : (HWp, HWoutp)           [only if fuse_crop] 0/1 valid/stride selection
      o_ref : (Bblk, Cout, HWoutp|HWp) lane-packed output block
    """
    if fuse_crop:
        x_ref, w_ref, b_ref, s_ref, o_ref = refs
    else:
        x_ref, w_ref, b_ref, o_ref = refs
        s_ref = None

    def body(i, carry):
        x = x_ref[i]                                       # (Cin, HWp)
        if K > 1:
            # im2col: tap-shifted copies stacked onto the contraction axis.
            # pltpu.roll is an XLU lane rotation (no misaligned slice/relayout).
            # Wrap-around only reaches columns that are never selected /
            # cropped (valid conv keeps y <= H-K, x <= W-K).
            cols = [x]
            for t in range(1, K * K):
                dy, dx = divmod(t, K)
                cols.append(pltpu.roll(x, (-(dy * W + dx)) % HWp, axis=1))
            xcol = jnp.concatenate(cols, axis=0)           # (K*K*Cin, HWp)
        else:
            xcol = x                                       # (Cin, HWp)

        # Single MXU contraction of depth K*K*Cin.
        acc = jnp.dot(w_ref[...], xcol,
                      preferred_element_type=jnp.float32)  # (Cout, HWp)
        if fuse_crop:
            # Fused valid/stride crop: gather the valid, strided columns into
            # a lane-packed tile with a 0/1 selection matmul (MXU-friendly
            # lane gather), so only the valid output hits HBM.
            acc = jnp.dot(acc, s_ref[...],
                          preferred_element_type=jnp.float32)  # (Cout, HWoutp)
        o_ref[i] = (acc + b_ref[...]).astype(o_ref.dtype)
        return carry

    # Structured loop (bounded live ranges / code size even for large Bblk);
    # unrolled only when short so the LLO scheduler still sees straight line.
    lax.fori_loop(0, Bblk, body, 0, unroll=(Bblk <= 8))


def _round_up(n, m):
    return ((n + m - 1) // m) * m


def _vmem_budget():
    """(vmem_limit_bytes, double-buffered activation-block budget), per chip gen."""
    try:
        phys = int(getattr(pltpu.get_tpu_info(), "vmem_capacity_bytes", 64 << 20))
    except Exception:            # query unavailable → assume smallest gen (v7x 64 MiB)
        phys = 64 << 20
    limit = min((phys * 3) // 4, 100 << 20)   # leave headroom for compiler scratch
    block_budget = min(limit // 2, 48 << 20)  # v6e/v5e: up to 48 MiB; v7x: ~24 MiB
    return int(limit), int(block_budget)


def _pick_batch_block(B, per_image_bytes, fixed_bytes, budget_bytes):
    """Largest divisor of B whose double-buffered in+out tile (plus resident
    weight/bias/selection blocks) fits the budget, capped at B//2 so the
    'parallel' batch grid axis keeps >= 2 steps for v7x dual-TC sharding."""
    cap = max(1, B // 2)
    best = 1
    for cand in range(1, cap + 1):
        if B % cand == 0 and 2 * cand * per_image_bytes + fixed_bytes <= budget_bytes:
            best = cand
    return best


def conv2d_forward(x, lstm_emb, weight, bias=None, *, stride=1,
                   out_dtype=None, fuse_crop=None):
    """cbn_resnet.Conv2d.forward: returns (conv(x), lstm_emb)."""
    B, Cin, H, W = x.shape
    Cout, Cin_w, K, K2 = weight.shape
    assert Cin_w == Cin and K == K2 and K <= min(H, W)
    out_dtype = x.dtype if out_dtype is None else out_dtype

    Hout = (H - K) // stride + 1
    Wout = (W - K) // stride + 1
    HW = H * W
    HWo = Hout * Wout
    HWp = _round_up(HW, 128)          # lane-dense (unmasked vst) input width
    HWop = _round_up(HWo, 128)        # lane-dense output width

    need_crop = (K > 1) or (stride > 1)
    if fuse_crop is None:
        # The in-kernel crop is a (HWp, HWop) selection matmul; only fuse it
        # while that matrix stays small relative to the activations.
        fuse_crop = need_crop and (HWp * HWop * 4 <= (8 << 20))
    fuse_crop = bool(fuse_crop and need_crop)
    HW_store = HWop if fuse_crop else HWp

    # ---------------- operand prep (wrapper side) ----------------
    x_flat = x.reshape(B, Cin, HW)                 # free: NCHW is contiguous
    if HWp != HW:
        x_flat = jnp.pad(x_flat, ((0, 0), (0, 0), (0, HWp - HW)))  # zero lane pad
    # (Cout, Cin, K, K) -> (Cout, K*K*Cin), tap-major to match in-kernel im2col.
    w2 = jnp.transpose(weight, (0, 2, 3, 1)).reshape(Cout, K * K * Cin)
    w2 = w2.astype(jnp.float32)
    if bias is None:
        bias = jnp.zeros((Cout,), jnp.float32)
    b_col = bias.reshape(Cout, 1).astype(jnp.float32)

    inputs = [x_flat, w2, b_col]
    sel_bytes = 0
    if fuse_crop:
        sel_rows = (np.arange(Hout)[:, None] * (stride * W)
                    + np.arange(Wout)[None, :] * stride).reshape(-1)
        S = np.zeros((HWp, HWop), np.float32)
        S[sel_rows, np.arange(HWo)] = 1.0
        inputs.append(jnp.asarray(S))
        sel_bytes = HWp * HWop * 4

    # ---------------- VMEM-aware batch blocking ----------------
    itemsize_in = int(x_flat.dtype.itemsize)
    itemsize_out = int(jnp.dtype(out_dtype).itemsize)
    per_image_bytes = Cin * HWp * itemsize_in + Cout * HW_store * itemsize_out
    fixed_bytes = 2 * (Cout * K * K * Cin * 4 + Cout * 4 + sel_bytes)
    vmem_limit, block_budget = _vmem_budget()
    Bblk = _pick_batch_block(B, per_image_bytes, fixed_bytes, block_budget)
    # TODO(synk): for feature maps where even a single image exceeds the VMEM
    # budget, add a spatial grid axis with a (K-1)-row halo instead of
    # whole-image blocks (hits v7x's 64 MiB physical VMEM first).

    in_specs = [
        pl.BlockSpec((Bblk, Cin, HWp), lambda b: (b, 0, 0)),
        pl.BlockSpec((Cout, K * K * Cin), lambda b: (0, 0)),
        pl.BlockSpec((Cout, 1), lambda b: (0, 0)),
    ]
    if fuse_crop:
        in_specs.append(pl.BlockSpec((HWp, HWop), lambda b: (0, 0)))
    out_spec = pl.BlockSpec((Bblk, Cout, HW_store), lambda b: (b, 0, 0))

    flops = 2 * B * Cout * K * K * Cin * HWp
    if fuse_crop:
        flops += 2 * B * Cout * HWp * HWop
    bytes_accessed = (B * Cin * HWp * itemsize_in
                      + B * Cout * HW_store * itemsize_out
                      + Cout * K * K * Cin * 4 + Cout * 4 + sel_bytes)

    kernel = partial(_conv_kernel, K=K, W=W, HWp=HWp, Bblk=Bblk,
                     fuse_crop=fuse_crop)
    y = pl.pallas_call(
        kernel,
        out_shape=jax.ShapeDtypeStruct((B, Cout, HW_store), out_dtype),
        grid_spec=pltpu.PrefetchScalarGridSpec(
            num_scalar_prefetch=0,
            grid=(B // Bblk,),
            in_specs=in_specs,
            out_specs=out_spec,
        ),
        compiler_params=pltpu.CompilerParams(
            dimension_semantics=("parallel",),
            vmem_limit_bytes=int(vmem_limit)),
        cost_estimate=pl.CostEstimate(
            flops=int(flops), transcendentals=0,
            bytes_accessed=int(bytes_accessed)),
    )(*inputs)

    # ---------------- output finalization ----------------
    if fuse_crop:
        y = y[:, :, :HWo].reshape(B, Cout, Hout, Wout)
    else:
        y = y[:, :, :HW].reshape(B, Cout, H, W)
        if need_crop:
            # Dense-store fallback: positions outside the valid/strided set
            # may contain wrapped-tap values from the in-kernel roll — they
            # MUST be cropped here and never consumed.
            y = y[:, :, :(Hout - 1) * stride + 1:stride,
                        :(Wout - 1) * stride + 1:stride]
    return y, lstm_emb


# -------------------- pure-JAX reference for sanity check -------------------
def _ref_conv(x, weight, bias, *, stride):
    y = lax.conv_general_dilated(
        x, weight, window_strides=(stride, stride), padding="VALID",
        dimension_numbers=("NCHW", "OIHW", "NCHW"))
    return y + bias[None, :, None, None]


if __name__ == "__main__":
    key = jax.random.PRNGKey(0)
    ks = jax.random.split(key, 6)

    B, Cin, H, W, Cout, E = 2, 4, 16, 16, 8, 32
    x = jax.random.normal(ks[0], (B, Cin, H, W), dtype=jnp.float32)     # NCHW
    lstm_emb = jax.random.normal(ks[1], (B, E), dtype=jnp.float32)

    # --- module defaults: kernel_size=1, stride=1, bias=True (f32 output) ---
    w1 = 0.1 * jax.random.normal(ks[2], (Cout, Cin, 1, 1), jnp.float32)
    b1 = 0.1 * jax.random.normal(ks[3], (Cout,), jnp.float32)
    y1, e1 = jax.jit(partial(conv2d_forward, stride=1))(x, lstm_emb, w1, b1)
    jax.block_until_ready((y1, e1))
    r1 = _ref_conv(x, w1, b1, stride=1)
    assert y1.shape == r1.shape == (B, Cout, H, W)
    assert np.allclose(np.asarray(y1), np.asarray(r1), atol=2e-4, rtol=2e-4)
    assert np.array_equal(np.asarray(e1), np.asarray(lstm_emb))

    # --- kernel_size=3, stride=2: fused in-kernel crop + bf16 writeback ---
    w3 = 0.1 * jax.random.normal(ks[4], (Cout, Cin, 3, 3), jnp.float32)
    b3 = 0.1 * jax.random.normal(ks[5], (Cout,), jnp.float32)
    y3, e3 = jax.jit(partial(conv2d_forward, stride=2,
                             out_dtype=jnp.bfloat16))(x, lstm_emb, w3, b3)
    jax.block_until_ready((y3, e3))
    r3 = _ref_conv(x, w3, b3, stride=2)
    assert y3.shape == r3.shape == (B, Cout, 7, 7)
    assert np.allclose(np.asarray(y3.astype(jnp.float32)), np.asarray(r3),
                       atol=2e-2, rtol=2e-2)
    assert np.array_equal(np.asarray(e3), np.asarray(lstm_emb))

    # --- same config through the dense-store fallback path (f32) ---
    y3d, _ = jax.jit(partial(conv2d_forward, stride=2, fuse_crop=False))(
        x, lstm_emb, w3, b3)
    jax.block_until_ready(y3d)
    assert np.allclose(np.asarray(y3d), np.asarray(r3), atol=2e-4, rtol=2e-4)

    # --- pointwise conv with stride>1 (subsampling fused into the kernel) ---
    y1s, _ = jax.jit(partial(conv2d_forward, stride=2))(x, lstm_emb, w1, b1)
    jax.block_until_ready(y1s)
    r1s = _ref_conv(x, w1, b1, stride=2)
    assert y1s.shape == r1s.shape == (B, Cout, 8, 8)
    assert np.allclose(np.asarray(y1s), np.asarray(r1s), atol=2e-4, rtol=2e-4)

    print("KERNEL_OK")
</pallas_src>

<mosaic_0001>
module attributes {stable_mosaic.version = 11 : i64} {
  func.func @_conv_kernel(%arg0: i32, %arg1: memref<1x4x256xf32, #tpu.memory_space<vmem>>, %arg2: memref<8x4xf32, #tpu.memory_space<vmem>>, %arg3: memref<8x1xf32, #tpu.memory_space<vmem>>, %arg4: memref<1x8x256xf32, #tpu.memory_space<vmem>>) attributes {dimension_semantics = [#tpu.dimension_semantics<parallel>], iteration_bounds = array<i64: 2>, scalar_prefetch = 0 : i64, scratch_operands = 0 : i64, tpu.core_type = #tpu.core_type<tc>, window_params = [{transform_indices = @transform_0, window_bounds = array<i64: 1, 4, 256>}, {pipeline_mode = #tpu.pipeline_mode<synchronous>, transform_indices = @transform_1, window_bounds = array<i64: 8, 4>}, {pipeline_mode = #tpu.pipeline_mode<synchronous>, transform_indices = @transform_2, window_bounds = array<i64: 8, 1>}, {transform_indices = @transform_3, window_bounds = array<i64: 1, 8, 256>}]} {
    %c0_i32 = arith.constant 0 : i32
    %0 = arith.index_cast %c0_i32 : i32 to index
    %c0 = arith.constant 0 : index
    %c0_0 = arith.constant 0 : index
    %1 = vector.load %arg1[%0, %c0, %c0_0] : memref<1x4x256xf32, #tpu.memory_space<vmem>>, vector<1x4x256xf32>
    %2 = vector.shape_cast %1 : vector<1x4x256xf32> to vector<4x256xf32>
    %c0_1 = arith.constant 0 : index
    %c0_2 = arith.constant 0 : index
    %3 = vector.load %arg2[%c0_1, %c0_2] : memref<8x4xf32, #tpu.memory_space<vmem>>, vector<8x4xf32>
    %cst = arith.constant dense<0.000000e+00> : vector<8x256xf32>
    %4 = tpu.matmul %3, %2, %cst {dimension_numbers = #tpu.dot_dimension_numbers<[1], [0], [0], [1], [0, 0, 1, 1], [], []>} : vector<8x4xf32>, vector<4x256xf32>, vector<8x256xf32> -> vector<8x256xf32>
    %c0_3 = arith.constant 0 : index
    %c0_4 = arith.constant 0 : index
    %5 = vector.load %arg3[%c0_3, %c0_4] : memref<8x1xf32, #tpu.memory_space<vmem>>, vector<8x1xf32>
    %6 = vector.broadcast %5 : vector<8x1xf32> to vector<8x256xf32>
    %7 = arith.addf %4, %6 : vector<8x256xf32>
    %8 = arith.index_cast %c0_i32 : i32 to index
    %c0_5 = arith.constant 0 : index
    %c0_6 = arith.constant 0 : index
    %9 = vector.load %arg4[%8, %c0_5, %c0_6] : memref<1x8x256xf32, #tpu.memory_space<vmem>>, vector<1x8x256xf32>
    %10 = vector.shape_cast %9 : vector<1x8x256xf32> to vector<8x256xf32>
    %11 = vector.shape_cast %7 : vector<8x256xf32> to vector<1x8x256xf32>
    tpu.vector_store %arg4[%8, %c0_5, %c0_6], %11 {strides = array<i32>} : memref<1x8x256xf32, #tpu.memory_space<vmem>>, vector<1x8x256xf32>,
    %c1_i32 = arith.constant 1 : i32
    return
  }
  func.func @transform_0(%arg0: i32) -> (i32, i32, i32) {
    %c0_i32 = arith.constant 0 : i32
    %c0_i32_0 = arith.constant 0 : i32
    %c0_i32_1 = arith.constant 0 : i32
    return %arg0, %c0_i32, %c0_i32_0 : i32, i32, i32
  }
  func.func @transform_1(%arg0: i32) -> (i32, i32) {
    %c0_i32 = arith.constant 0 : i32
    %c0_i32_0 = arith.constant 0 : i32
    %c0_i32_1 = arith.constant 0 : i32
    return %c0_i32, %c0_i32_0 : i32, i32
  }
  func.func @transform_2(%arg0: i32) -> (i32, i32) {
    %c0_i32 = arith.constant 0 : i32
    %c0_i32_0 = arith.constant 0 : i32
    %c0_i32_1 = arith.constant 0 : i32
    return %c0_i32, %c0_i32_0 : i32, i32
  }
  func.func @transform_3(%arg0: i32) -> (i32, i32, i32) {
    %c0_i32 = arith.constant 0 : i32
    %c0_i32_0 = arith.constant 0 : i32
    %c0_i32_1 = arith.constant 0 : i32
    return %arg0, %c0_i32, %c0_i32_0 : i32, i32, i32
  }
}

</mosaic_0001>

<bundles_post_ra>
// kernel: conv2d_forward.1
= control target key start
LH: loop header
LB: loop body
LE: loop exit
PB: predicated region body
PF: predicated region fallthrough
CT: control target
= control target key end

     0   :  { %s376_s12 = smov 0   ;;  %s399_s0 = inlined_call_operand.vmem [shape: f32[2,4,256], index: 0, kind: input, shape index: {}]   ;;  %s400_s1 = inlined_call_operand.vmem [shape: f32[8,4], index: 1, kind: input, shape index: {}]   ;;  %s401_s2 = inlined_call_operand.vmem [shape: f32[8,1], index: 2, kind: input, shape index: {}]   ;;  %s402_s3 = inlined_call_operand.vmem [shape: f32[2,8,256], index: 3, kind: output, shape index: {}]  }
   0x1 LB: > { %s318_s13 = sadd.s32 4294967295, %s352_s12   ;;  %p322_p0 = scmp.ge.s32.totalorder %s352_s12, 1  ;;  %s352_s12 = sphi %s376_s12, %s13_s12  }
   0x2   : > { %p137_p1 = scmp.lt.s32.totalorder %s352_s12, 3 }
   0x4   : > { %p138_p2 = pnand %p322_p0, %p137_p1 }
   0x5   : > { %p161_p3 = scmp.lt.s32.totalorder (!%p138_p2), %s318_s13, 1 }
   0x6   : > { %141 = sbr.rel (%p138_p2) target bundleno = 217 (0xd9), region = 32 }
   0xb   : > { %v354_v0 = vmov 0.0   ;;  %v355_v1 = vmov 0   ;;  %v173_v2 = vld [vmem:[%s401_s2] sm:$0xff]  ;;  %s404_s13 = smov (!%p161_p3, %s318_s13), 1  ;;  %vm185_vm0 = vcmask 1043456   ;;  %vm181_vm1 = vcmask 31744  }
   0xc   : > { %254 = vmatprep.mubr.f32.mxu0 %v354_v0  ;;  %344 = vset.pattern.permute.xlu0 %v355_v1  ;;  %s332_s16 = sshll.u32 %s404_s13, 3  ;;  %v172_v5 = vld [vmem:[%s400_s1] sm:$0xff]  ;;  %s333_s22 = sshll.u32 %s404_s13, 4 }
   0xd   : > { %176 = vperm.xlu0 %344, %v173_v2   ;;  %s165_s19 = scalar_lea.vmem %s399_s0, %s332_s16  ;;  %s170_s25 = scalar_lea.vmem %s402_s3, %s333_s22 }
   0xe   : > { %v171_v3 = vld [vmem:[%s165_s19] sm:$0xff] }
   0xf   : > { %v180_v4 = vcombine.high %v171_v3, %v171_v3 }
  0x11   : > { %327 = vmatprep.subr.msk.mxu0 %vm185_vm0, %v180_v4 }
  0x12   : > { %328 = vmatpush1.msk.msra.mxu0 %vm185_vm0, %v171_v3 }
  0x13   : > { %329 = vmatmul.mubr.msk.f32.vlgmr.msra.gmra.mxu0 %vm181_vm1, %v172_v5 }
  0x88   : > { %v177_v6 = vpop.permute.xlu0 %176 }
  0xd3   : > { %v256_v7 = vpop.f32.mrf.mxu0 }
  0xd4   : > { %v257_v8 = vadd.f32 %v256_v7, %v177_v6 }
  0xd5   : > { %v258_v9 = vpop.f32.mrf.mxu0 }
  0xd6   : > { %261 = vst [vmem:[%s170_s25] sm:$0xff] %v257_v8  ;;  %v259_v10 = vadd.f32 %v258_v9, %v177_v6 }
  0xd8   : > { %262 = vst [vmem:[%s170_s25 + $0x8] sm:$0xff] %v259_v10 }
  0xd9 PF: > { %s13_s12 = sadd.s32 1, %s352_s12  }
  0xda   : > { %p10_p4 = scmp.ge.s32.totalorder %s13_s12, 4  }
  0xdc   :  { %12 = sbr.rel (!%p10_p4) target bundleno = 1 (0x1), region = 62 }

</bundles_post_ra>
